<compile_context>
chip_gen: v5e
topology: v5e:2x2
jax: 0.10.0
libtpu: 0.0.40
codegen_flags: <defaults>
</compile_context>

<pallas_src>
import jax
import jax.numpy as jnp
from jax.experimental import pallas as pl
from jax.experimental.pallas import tpu as pltpu


# ----------------------------------------------------------------------------- kernels

def _spatial_attention_kernel_vpu(x_ref, w1_ref, b1_ref, w2_ref, b2_ref, o_ref):
    """Small-Cq path: weights live in SMEM, channel math is an unrolled VPU MAC.

    x_ref : (1, C, T) VMEM tile (native dtype)
    w1_ref: (Cq, C)   SMEM   b1_ref: (Cq,) SMEM
    w2_ref: (1, Cq)   SMEM   b2_ref: (1,)  SMEM
    """
    Cq, C = w1_ref.shape
    x = x_ref[0]                                    # (C, T), native dtype
    T = x.shape[-1]

    # a = sigmoid(b2 + sum_q w2[q] * relu(b1[q] + sum_c w1[q,c] * x[c,:]))
    a_acc = jnp.full((1, T), b2_ref[0], dtype=jnp.float32)
    for q in range(Cq):
        h_q = jnp.full((1, T), b1_ref[q], dtype=jnp.float32)
        for c in range(C):
            h_q = h_q + w1_ref[q, c] * x[c:c + 1, :].astype(jnp.float32)
        a_acc = a_acc + w2_ref[0, q] * jnp.maximum(h_q, 0.0)
    a = jax.nn.sigmoid(a_acc)                       # (1, T) f32

    # broadcast multiply over the channel (sublane) axis; x stays native dtype
    o_ref[0] = (x * a.astype(x.dtype)).astype(o_ref.dtype)


def _spatial_attention_kernel_mxu(x_ref, w1_ref, b1_ref, w2_ref, b2_ref, o_ref):
    """General path: two lane-dense MXU matmuls over the channel axis.

    x_ref : (1, C, T) VMEM tile (native dtype)
    w1_ref: (Cq, C) VMEM   b1_ref: (Cq, 1) VMEM
    w2_ref: (1, Cq) VMEM   b2_ref: (1, 1)  VMEM
    """
    x = x_ref[0]                                    # (C, T), native dtype (no f32 copy)

    # 1x1 conv #1 + ReLU : (Cq, C) @ (C, T) -> (Cq, T), f32 accumulation
    h = jnp.dot(w1_ref[...].astype(x.dtype), x,
                preferred_element_type=jnp.float32) + b1_ref[...]
    h = jnp.maximum(h, 0.0)

    # 1x1 conv #2 + Sigmoid : (1, Cq) @ (Cq, T) -> (1, T)
    a = jnp.dot(w2_ref[...], h, preferred_element_type=jnp.float32) + b2_ref[...]
    a = jax.nn.sigmoid(a)

    o_ref[0] = (x * a.astype(x.dtype)).astype(o_ref.dtype)


# ----------------------------------------------------------------------------- chip queries

def _vmem_capacity_bytes() -> int:
    try:
        v = getattr(pltpu.get_tpu_info(), "vmem_capacity_bytes", None)
        if isinstance(v, int) and v > 0:
            return v
    except Exception:
        pass
    return 64 * 1024 * 1024       # conservative fallback (v7x per-TC VMEM)


def _num_tensorcores() -> int:
    try:
        info = pltpu.get_tpu_info()
        for attr in ("num_cores", "core_count", "num_tensorcores", "tensorcore_count"):
            v = getattr(info, attr, None)
            if isinstance(v, int) and v > 0:
                return max(1, min(2, v))
    except Exception:
        pass
    try:
        kind = jax.devices()[0].device_kind.lower()
        if "v7" in kind:
            return 2
    except Exception:
        pass
    return 1                       # safe default (v5e / v6e are single-TC)


# ----------------------------------------------------------------------------- wrapper

def spatial_attention(x_nchw, w1, b1, w2, b2, *,
                      max_block_bytes=None, matmul_path=None):
    """x_nchw: (N, C, H, W). w1: (Cq, C), b1: (Cq,), w2: (1, Cq), b2: (1,).

    matmul_path: None (auto), "vpu" (SMEM-scalar MAC), or "mxu" (jnp.dot).
    """
    N, C, H, W = x_nchw.shape
    Cq = w1.shape[0]
    HW = H * W
    itemsize = jnp.dtype(x_nchw.dtype).itemsize

    vmem_cap = _vmem_capacity_bytes()
    ncores = _num_tensorcores()

    # ~8 MiB blocks on 128 MiB-VMEM chips (v5e/v6e), ~4 MiB on 64 MiB (v7x).
    if max_block_bytes is None:
        max_block_bytes = int(min(8 << 20, max(2 << 20, vmem_cap // 16)))

    # ---- tile sizing along the flattened spatial (lane) axis -----------------
    lane = 128
    hw_blocks = pl.cdiv(HW, lane)                      # 128-wide column blocks
    bytes_per_block_col = C * lane * itemsize
    max_blocks = max(1, max_block_bytes // bytes_per_block_col)
    blocks_per_tile = min(hw_blocks, max_blocks)

    # keep enough grid steps for pipeline overlap: 2 per TensorCore
    min_steps = 2 * ncores
    while N * pl.cdiv(hw_blocks, blocks_per_tile) < min_steps and blocks_per_tile > 1:
        blocks_per_tile = max(1, blocks_per_tile // 2)

    # v7x (2 TCs): keep the total step count even so neither core idles at the end
    if ncores >= 2 and (N * pl.cdiv(hw_blocks, blocks_per_tile)) % 2 == 1:
        for bpt in range(blocks_per_tile, 0, -1):
            if (N * pl.cdiv(hw_blocks, bpt)) % 2 == 0:
                blocks_per_tile = bpt
                break

    tile_hw = blocks_per_tile * lane
    num_hw_tiles = pl.cdiv(HW, tile_hw)
    grid = (N, num_hw_tiles)

    # ---- free reshape to (N, C, H*W): NO pad, NO output slice ----------------
    x_flat = x_nchw.reshape(N, C, HW)

    if matmul_path is None:
        use_vpu = (Cq <= 16) and (Cq * C <= 512)
    else:
        use_vpu = (matmul_path == "vpu")

    x_spec = pl.BlockSpec((1, C, tile_hw), lambda n, t: (n, 0, t))
    o_spec = pl.BlockSpec((1, C, tile_hw), lambda n, t: (n, 0, t))

    if use_vpu:
        kernel = _spatial_attention_kernel_vpu
        smem_spec = pl.BlockSpec(memory_space=pltpu.MemorySpace.SMEM)
        in_specs = [x_spec, smem_spec, smem_spec, smem_spec, smem_spec]
        args = (x_flat, w1, b1, w2, b2)
    else:
        kernel = _spatial_attention_kernel_mxu
        in_specs = [
            x_spec,
            pl.BlockSpec((Cq, C), lambda n, t: (0, 0)),    # w1 (full, resident)
            pl.BlockSpec((Cq, 1), lambda n, t: (0, 0)),    # b1
            pl.BlockSpec((1, Cq), lambda n, t: (0, 0)),    # w2
            pl.BlockSpec((1, 1), lambda n, t: (0, 0)),     # b2
        ]
        args = (x_flat, w1, b1.reshape(Cq, 1), w2, b2.reshape(1, 1))

    # explicit VMEM budget: 2x double-buffered in/out tiles + small intermediates
    block_bytes = C * tile_hw * itemsize
    vmem_limit = int(min(max(vmem_cap - (8 << 20), 16 << 20),
                         max(32 << 20, 5 * block_bytes)))

    cost = pl.CostEstimate(
        flops=int(N * HW * (2 * Cq * C + 2 * Cq + C)),
        transcendentals=int(N * HW),
        bytes_accessed=int(2 * N * C * HW * itemsize
                           + (Cq * C + Cq + Cq + 1) * 4),
    )

    out = pl.pallas_call(
        kernel,
        out_shape=jax.ShapeDtypeStruct((N, C, HW), x_nchw.dtype),
        grid_spec=pltpu.PrefetchScalarGridSpec(
            num_scalar_prefetch=0,
            grid=grid,
            in_specs=in_specs,
            out_specs=o_spec,
        ),
        compiler_params=pltpu.CompilerParams(
            dimension_semantics=("parallel", "parallel"),
            vmem_limit_bytes=vmem_limit,
        ),
        cost_estimate=cost,
    )(*args)

    return out.reshape(N, C, H, W)


# ----------------------------------------------------------------------------- reference

def _reference(x_nchw, w1, b1, w2, b2):
    # pure-JAX reference of the PyTorch forward (1x1 convs are channel matmuls)
    N, C, H, W = x_nchw.shape
    xf = x_nchw.reshape(N, C, H * W).astype(jnp.float32)                   # (N,C,HW)
    h = jnp.maximum(jnp.einsum("oc,nct->not", w1, xf) + b1[None, :, None], 0.0)
    a = jax.nn.sigmoid(jnp.einsum("oc,nct->not", w2, h) + b2[None, :, None])
    y = xf * a
    return y.reshape(N, C, H, W).astype(x_nchw.dtype)


if __name__ == "__main__":
    # small shapes consistent with the module: in_channels=8 -> hidden=2
    N, C, H, W = 2, 8, 16, 16
    Cq = C // 4

    key = jax.random.PRNGKey(0)
    kx, k1, k2, k3, k4 = jax.random.split(key, 5)

    x = jax.random.normal(kx, (N, C, H, W), dtype=jnp.float32)
    # deterministic synthetic parameters (Conv2d 1x1 weights squeezed to 2D)
    w1 = jax.random.normal(k1, (Cq, C), dtype=jnp.float32) * 0.3
    b1 = jax.random.normal(k2, (Cq,), dtype=jnp.float32) * 0.1
    w2 = jax.random.normal(k3, (1, Cq), dtype=jnp.float32) * 0.3
    b2 = jax.random.normal(k4, (1,), dtype=jnp.float32) * 0.1

    y_ref = _reference(x, w1, b1, w2, b2)

    # default (auto) path: VPU/SMEM channel MAC for this tiny Cq
    y = spatial_attention(x, w1, b1, w2, b2)
    jax.block_until_ready(y)
    assert y.shape == (N, C, H, W)
    assert jnp.allclose(y, y_ref, atol=1e-5, rtol=1e-5), "mismatch vs reference (vpu path)"

    # also exercise the MXU (jnp.dot) path used for larger hidden widths
    y_mxu = spatial_attention(x, w1, b1, w2, b2, matmul_path="mxu")
    jax.block_until_ready(y_mxu)
    assert jnp.allclose(y_mxu, y_ref, atol=1e-5, rtol=1e-5), "mismatch vs reference (mxu path)"

    print("KERNEL_OK")
</pallas_src>

<mosaic_0001>
module attributes {stable_mosaic.version = 11 : i64} {
  func.func @_spatial_attention_kernel_vpu(%arg0: i32, %arg1: i32, %arg2: memref<1x8x256xf32, #tpu.memory_space<vmem>>, %arg3: memref<2x8xf32, #tpu.memory_space<smem>>, %arg4: memref<2xf32, #tpu.memory_space<smem>>, %arg5: memref<1x2xf32, #tpu.memory_space<smem>>, %arg6: memref<1xf32, #tpu.memory_space<smem>>, %arg7: memref<1x8x256xf32, #tpu.memory_space<vmem>>) attributes {dimension_semantics = [#tpu.dimension_semantics<parallel>, #tpu.dimension_semantics<parallel>], iteration_bounds = array<i64: 2, 1>, scalar_prefetch = 0 : i64, scratch_operands = 0 : i64, tpu.core_type = #tpu.core_type<tc>, window_params = [{transform_indices = @transform_0, window_bounds = array<i64: 1, 8, 256>}, {transform_indices = @transform_1, window_bounds = array<i64: 2, 8>}, {transform_indices = @transform_2, window_bounds = array<i64: 2>}, {transform_indices = @transform_3, window_bounds = array<i64: 1, 2>}, {transform_indices = @transform_4, window_bounds = array<i64: 1>}, {transform_indices = @transform_5, window_bounds = array<i64: 1, 8, 256>}]} {
    %c0 = arith.constant 0 : index
    %c0_0 = arith.constant 0 : index
    %c0_1 = arith.constant 0 : index
    %0 = vector.load %arg2[%c0, %c0_0, %c0_1] : memref<1x8x256xf32, #tpu.memory_space<vmem>>, vector<1x8x256xf32>
    %1 = vector.shape_cast %0 : vector<1x8x256xf32> to vector<8x256xf32>
    %c0_2 = arith.constant 0 : index
    %2 = memref.load %arg6[%c0_2] : memref<1xf32, #tpu.memory_space<smem>>
    %3 = vector.broadcast %2 : f32 to vector<1x256xf32>
    %c0_3 = arith.constant 0 : index
    %4 = memref.load %arg4[%c0_3] : memref<2xf32, #tpu.memory_space<smem>>
    %5 = vector.broadcast %4 : f32 to vector<1x256xf32>
    %c0_4 = arith.constant 0 : index
    %c0_5 = arith.constant 0 : index
    %6 = memref.load %arg3[%c0_4, %c0_5] : memref<2x8xf32, #tpu.memory_space<smem>>
    %7 = vector.extract_strided_slice %1 {offsets = [0, 0], sizes = [1, 256], strides = [1, 1]} : vector<8x256xf32> to vector<1x256xf32>
    %8 = vector.broadcast %6 : f32 to vector<1x256xf32>
    %9 = arith.mulf %8, %7 : vector<1x256xf32>
    %10 = arith.addf %5, %9 : vector<1x256xf32>
    %c0_6 = arith.constant 0 : index
    %c1 = arith.constant 1 : index
    %11 = memref.load %arg3[%c0_6, %c1] : memref<2x8xf32, #tpu.memory_space<smem>>
    %12 = vector.extract_strided_slice %1 {offsets = [1, 0], sizes = [1, 256], strides = [1, 1]} : vector<8x256xf32> to vector<1x256xf32>
    %13 = vector.broadcast %11 : f32 to vector<1x256xf32>
    %14 = arith.mulf %13, %12 : vector<1x256xf32>
    %15 = arith.addf %10, %14 : vector<1x256xf32>
    %c0_7 = arith.constant 0 : index
    %c2 = arith.constant 2 : index
    %16 = memref.load %arg3[%c0_7, %c2] : memref<2x8xf32, #tpu.memory_space<smem>>
    %17 = vector.extract_strided_slice %1 {offsets = [2, 0], sizes = [1, 256], strides = [1, 1]} : vector<8x256xf32> to vector<1x256xf32>
    %18 = vector.broadcast %16 : f32 to vector<1x256xf32>
    %19 = arith.mulf %18, %17 : vector<1x256xf32>
    %20 = arith.addf %15, %19 : vector<1x256xf32>
    %c0_8 = arith.constant 0 : index
    %c3 = arith.constant 3 : index
    %21 = memref.load %arg3[%c0_8, %c3] : memref<2x8xf32, #tpu.memory_space<smem>>
    %22 = vector.extract_strided_slice %1 {offsets = [3, 0], sizes = [1, 256], strides = [1, 1]} : vector<8x256xf32> to vector<1x256xf32>
    %23 = vector.broadcast %21 : f32 to vector<1x256xf32>
    %24 = arith.mulf %23, %22 : vector<1x256xf32>
    %25 = arith.addf %20, %24 : vector<1x256xf32>
    %c0_9 = arith.constant 0 : index
    %c4 = arith.constant 4 : index
    %26 = memref.load %arg3[%c0_9, %c4] : memref<2x8xf32, #tpu.memory_space<smem>>
    %27 = vector.extract_strided_slice %1 {offsets = [4, 0], sizes = [1, 256], strides = [1, 1]} : vector<8x256xf32> to vector<1x256xf32>
    %28 = vector.broadcast %26 : f32 to vector<1x256xf32>
    %29 = arith.mulf %28, %27 : vector<1x256xf32>
    %30 = arith.addf %25, %29 : vector<1x256xf32>
    %c0_10 = arith.constant 0 : index
    %c5 = arith.constant 5 : index
    %31 = memref.load %arg3[%c0_10, %c5] : memref<2x8xf32, #tpu.memory_space<smem>>
    %32 = vector.extract_strided_slice %1 {offsets = [5, 0], sizes = [1, 256], strides = [1, 1]} : vector<8x256xf32> to vector<1x256xf32>
    %33 = vector.broadcast %31 : f32 to vector<1x256xf32>
    %34 = arith.mulf %33, %32 : vector<1x256xf32>
    %35 = arith.addf %30, %34 : vector<1x256xf32>
    %c0_11 = arith.constant 0 : index
    %c6 = arith.constant 6 : index
    %36 = memref.load %arg3[%c0_11, %c6] : memref<2x8xf32, #tpu.memory_space<smem>>
    %37 = vector.extract_strided_slice %1 {offsets = [6, 0], sizes = [1, 256], strides = [1, 1]} : vector<8x256xf32> to vector<1x256xf32>
    %38 = vector.broadcast %36 : f32 to vector<1x256xf32>
    %39 = arith.mulf %38, %37 : vector<1x256xf32>
    %40 = arith.addf %35, %39 : vector<1x256xf32>
    %c0_12 = arith.constant 0 : index
    %c7 = arith.constant 7 : index
    %41 = memref.load %arg3[%c0_12, %c7] : memref<2x8xf32, #tpu.memory_space<smem>>
    %42 = vector.extract_strided_slice %1 {offsets = [7, 0], sizes = [1, 256], strides = [1, 1]} : vector<8x256xf32> to vector<1x256xf32>
    %43 = vector.broadcast %41 : f32 to vector<1x256xf32>
    %44 = arith.mulf %43, %42 : vector<1x256xf32>
    %45 = arith.addf %40, %44 : vector<1x256xf32>
    %c0_13 = arith.constant 0 : index
    %c0_14 = arith.constant 0 : index
    %46 = memref.load %arg5[%c0_13, %c0_14] : memref<1x2xf32, #tpu.memory_space<smem>>
    %cst = arith.constant 0.000000e+00 : f32
    %47 = vector.broadcast %cst : f32 to vector<1x256xf32>
    %48 = arith.maximumf %45, %47 : vector<1x256xf32>
    %49 = vector.broadcast %46 : f32 to vector<1x256xf32>
    %50 = arith.mulf %49, %48 : vector<1x256xf32>
    %51 = arith.addf %3, %50 : vector<1x256xf32>
    %c1_15 = arith.constant 1 : index
    %52 = memref.load %arg4[%c1_15] : memref<2xf32, #tpu.memory_space<smem>>
    %53 = vector.broadcast %52 : f32 to vector<1x256xf32>
    %c1_16 = arith.constant 1 : index
    %c0_17 = arith.constant 0 : index
    %54 = memref.load %arg3[%c1_16, %c0_17] : memref<2x8xf32, #tpu.memory_space<smem>>
    %55 = vector.extract_strided_slice %1 {offsets = [0, 0], sizes = [1, 256], strides = [1, 1]} : vector<8x256xf32> to vector<1x256xf32>
    %56 = vector.broadcast %54 : f32 to vector<1x256xf32>
    %57 = arith.mulf %56, %55 : vector<1x256xf32>
    %58 = arith.addf %53, %57 : vector<1x256xf32>
    %c1_18 = arith.constant 1 : index
    %c1_19 = arith.constant 1 : index
    %59 = memref.load %arg3[%c1_18, %c1_19] : memref<2x8xf32, #tpu.memory_space<smem>>
    %60 = vector.extract_strided_slice %1 {offsets = [1, 0], sizes = [1, 256], strides = [1, 1]} : vector<8x256xf32> to vector<1x256xf32>
    %61 = vector.broadcast %59 : f32 to vector<1x256xf32>
    %62 = arith.mulf %61, %60 : vector<1x256xf32>
    %63 = arith.addf %58, %62 : vector<1x256xf32>
    %c1_20 = arith.constant 1 : index
    %c2_21 = arith.constant 2 : index
    %64 = memref.load %arg3[%c1_20, %c2_21] : memref<2x8xf32, #tpu.memory_space<smem>>
    %65 = vector.extract_strided_slice %1 {offsets = [2, 0], sizes = [1, 256], strides = [1, 1]} : vector<8x256xf32> to vector<1x256xf32>
    %66 = vector.broadcast %64 : f32 to vector<1x256xf32>
    %67 = arith.mulf %66, %65 : vector<1x256xf32>
    %68 = arith.addf %63, %67 : vector<1x256xf32>
    %c1_22 = arith.constant 1 : index
    %c3_23 = arith.constant 3 : index
    %69 = memref.load %arg3[%c1_22, %c3_23] : memref<2x8xf32, #tpu.memory_space<smem>>
    %70 = vector.extract_strided_slice %1 {offsets = [3, 0], sizes = [1, 256], strides = [1, 1]} : vector<8x256xf32> to vector<1x256xf32>
    %71 = vector.broadcast %69 : f32 to vector<1x256xf32>
    %72 = arith.mulf %71, %70 : vector<1x256xf32>
    %73 = arith.addf %68, %72 : vector<1x256xf32>
    %c1_24 = arith.constant 1 : index
    %c4_25 = arith.constant 4 : index
    %74 = memref.load %arg3[%c1_24, %c4_25] : memref<2x8xf32, #tpu.memory_space<smem>>
    %75 = vector.extract_strided_slice %1 {offsets = [4, 0], sizes = [1, 256], strides = [1, 1]} : vector<8x256xf32> to vector<1x256xf32>
    %76 = vector.broadcast %74 : f32 to vector<1x256xf32>
    %77 = arith.mulf %76, %75 : vector<1x256xf32>
    %78 = arith.addf %73, %77 : vector<1x256xf32>
    %c1_26 = arith.constant 1 : index
    %c5_27 = arith.constant 5 : index
    %79 = memref.load %arg3[%c1_26, %c5_27] : memref<2x8xf32, #tpu.memory_space<smem>>
    %80 = vector.extract_strided_slice %1 {offsets = [5, 0], sizes = [1, 256], strides = [1, 1]} : vector<8x256xf32> to vector<1x256xf32>
    %81 = vector.broadcast %79 : f32 to vector<1x256xf32>
    %82 = arith.mulf %81, %80 : vector<1x256xf32>
    %83 = arith.addf %78, %82 : vector<1x256xf32>
    %c1_28 = arith.constant 1 : index
    %c6_29 = arith.constant 6 : index
    %84 = memref.load %arg3[%c1_28, %c6_29] : memref<2x8xf32, #tpu.memory_space<smem>>
    %85 = vector.extract_strided_slice %1 {offsets = [6, 0], sizes = [1, 256], strides = [1, 1]} : vector<8x256xf32> to vector<1x256xf32>
    %86 = vector.broadcast %84 : f32 to vector<1x256xf32>
    %87 = arith.mulf %86, %85 : vector<1x256xf32>
    %88 = arith.addf %83, %87 : vector<1x256xf32>
    %c1_30 = arith.constant 1 : index
    %c7_31 = arith.constant 7 : index
    %89 = memref.load %arg3[%c1_30, %c7_31] : memref<2x8xf32, #tpu.memory_space<smem>>
    %90 = vector.extract_strided_slice %1 {offsets = [7, 0], sizes = [1, 256], strides = [1, 1]} : vector<8x256xf32> to vector<1x256xf32>
    %91 = vector.broadcast %89 : f32 to vector<1x256xf32>
    %92 = arith.mulf %91, %90 : vector<1x256xf32>
    %93 = arith.addf %88, %92 : vector<1x256xf32>
    %c0_32 = arith.constant 0 : index
    %c1_33 = arith.constant 1 : index
    %94 = memref.load %arg5[%c0_32, %c1_33] : memref<1x2xf32, #tpu.memory_space<smem>>
    %cst_34 = arith.constant 0.000000e+00 : f32
    %95 = vector.broadcast %cst_34 : f32 to vector<1x256xf32>
    %96 = arith.maximumf %93, %95 : vector<1x256xf32>
    %97 = vector.broadcast %94 : f32 to vector<1x256xf32>
    %98 = arith.mulf %97, %96 : vector<1x256xf32>
    %99 = arith.addf %51, %98 : vector<1x256xf32>
    %100 = arith.negf %99 : vector<1x256xf32>
    %101 = math.exp %100 : vector<1x256xf32>
    %cst_35 = arith.constant 1.000000e+00 : f32
    %102 = vector.broadcast %cst_35 : f32 to vector<1x256xf32>
    %103 = arith.addf %102, %101 : vector<1x256xf32>
    %104 = arith.divf %102, %103 : vector<1x256xf32>
    %105 = vector.broadcast %104 : vector<1x256xf32> to vector<8x256xf32>
    %106 = arith.mulf %1, %105 : vector<8x256xf32>
    %c0_36 = arith.constant 0 : index
    %c0_37 = arith.constant 0 : index
    %c0_38 = arith.constant 0 : index
    %107 = vector.load %arg7[%c0_36, %c0_37, %c0_38] : memref<1x8x256xf32, #tpu.memory_space<vmem>>, vector<1x8x256xf32>
    %108 = vector.shape_cast %107 : vector<1x8x256xf32> to vector<8x256xf32>
    %109 = vector.shape_cast %106 : vector<8x256xf32> to vector<1x8x256xf32>
    tpu.vector_store %arg7[%c0_36, %c0_37, %c0_38], %109 {strides = array<i32>} : memref<1x8x256xf32, #tpu.memory_space<vmem>>, vector<1x8x256xf32>,
    return
  }
  func.func @transform_0(%arg0: i32, %arg1: i32) -> (i32, i32, i32) {
    %c0_i32 = arith.constant 0 : i32
    %c0_i32_0 = arith.constant 0 : i32
    return %arg0, %c0_i32, %arg1 : i32, i32, i32
  }
  func.func @transform_1(%arg0: i32, %arg1: i32) -> (i32, i32) {
    %c0_i32 = arith.constant 0 : i32
    %c0_i32_0 = arith.constant 0 : i32
    %c0_i32_1 = arith.constant 0 : i32
    return %c0_i32, %c0_i32_0 : i32, i32
  }
  func.func @transform_2(%arg0: i32, %arg1: i32) -> i32 {
    %c0_i32 = arith.constant 0 : i32
    %c0_i32_0 = arith.constant 0 : i32
    return %c0_i32 : i32
  }
  func.func @transform_3(%arg0: i32, %arg1: i32) -> (i32, i32) {
    %c0_i32 = arith.constant 0 : i32
    %c0_i32_0 = arith.constant 0 : i32
    %c0_i32_1 = arith.constant 0 : i32
    return %c0_i32, %c0_i32_0 : i32, i32
  }
  func.func @transform_4(%arg0: i32, %arg1: i32) -> i32 {
    %c0_i32 = arith.constant 0 : i32
    %c0_i32_0 = arith.constant 0 : i32
    return %c0_i32 : i32
  }
  func.func @transform_5(%arg0: i32, %arg1: i32) -> (i32, i32, i32) {
    %c0_i32 = arith.constant 0 : i32
    %c0_i32_0 = arith.constant 0 : i32
    return %arg0, %c0_i32, %arg1 : i32, i32, i32
  }
}

</mosaic_0001>

<bundles_post_ra>
// kernel: tpu_custom_call.1
= control target key start
LH: loop header
LB: loop body
LE: loop exit
PB: predicated region body
PF: predicated region fallthrough
CT: control target
= control target key end

     0   :  { %s1276_s0 = inlined_call_operand.hbm [shape: f32[2,8,256], index: 0, kind: input, shape index: {}]   ;;  %s1277_s1 = inlined_call_operand.vmem [shape: f32[2,8], index: 1, kind: input, shape index: {}]   ;;  %s1278_s2 = inlined_call_operand.vmem [shape: f32[2], index: 2, kind: input, shape index: {}]   ;;  %s1279_s3 = inlined_call_operand.vmem [shape: f32[1,2], index: 3, kind: input, shape index: {}]   ;;  %s1280_s4 = inlined_call_operand.<no memory space> [shape: f32[1], index: 4, kind: input, shape index: {}]   ;;  %s1281_s5 = inlined_call_operand.hbm [shape: f32[2,8,256], index: 5, kind: output, shape index: {}]  }
   0x1   :  { %10 = sst [smem:[#allocation2]] %s1280_s4 }
   0x2   :  { %11 = vsyncpa [#allocation4], 0 }
   0x3   :  { %13 = vsyncpa [#allocation4 + $0x1], 0 }
   0x4   :  { %14 = vsyncpa [#allocation6], 0 }
   0x5   :  { %15 = vsyncpa [#allocation9], 0 }
   0x6   :  { %16 = vsyncpa [#allocation5], 0 }
   0x7   :  { %18 = vsyncpa [#allocation5 + $0x1], 0  ;;  %s1031_s20 = smov 0   ;;  %s1033_s21 = smov 0  }
   0x8   :  { %s1035_s22 = smov 0   ;;  %s1037_s23 = smov 0  }
   0x9   :  { %s1039_s24 = smov 0   ;;  %s1041_s25 = smov 0  }
   0xa LB: > { %s685_s4 = sadd.s32 4294967295, %s993_s25   ;;  %s686_s26 = sadd.s32 4294967294, %s993_s25   ;;  %s993_s25 = sphi %s1041_s25, %s24_s25   ;;  %s989_s24 = sphi %s1039_s24, %s1293_s24   ;;  %s985_s23 = sphi %s1037_s23, %s1292_s23   ;;  %s981_s22 = sphi %s1035_s22, %s1291_s22   ;;  %s977_s21 = sphi %s1033_s21, %s1290_s21   ;;  %s973_s20 = sphi %s1031_s20, %s1289_s20  }
   0xb   : > { %p58_p0 = scmp.ne.s32.totalorder %s977_s21, %s973_s20  ;;  %p1065_p1 = scmp.eq.s32.totalorder %s685_s4, 0 }
   0xc   : > { %p1069_p2 = scmp.eq.s32.totalorder %s685_s4, 1  ;;  %p174_p3 = scmp.eq.s32.totalorder %s686_s26, 1 }
   0xd   : > { %p1075_p4 = por %p1065_p1, %p58_p0  ;;  %p687_p5 = scmp.ge.s32.totalorder %s993_s25, 1 }
   0xe   : > { %p1080_p6 = por %p174_p3, %p58_p0  ;;  %p181_p7 = scmp.lt.s32.totalorder %s993_s25, 3 }
   0xf   : > { %s203_s8 = sshll.u32 %s1278_s2, 4  ;;  %p691_p9 = scmp.ge.s32.totalorder %s993_s25, 2  ;;  %s204_s8 = int_to_ptr.vmem [resolvable:$true] %s203_s8 }
  0x10   : > { %p1088_p8 = pnand %p687_p5, %p181_p7  ;;  %s193_s12 = sshll.u32 %s1277_s1, 4  ;;  %s194_s12 = int_to_ptr.vmem [resolvable:$true] %s193_s12 }
  0x11   : > { %s213_s15 = sshll.u32 %s1279_s3, 4  ;;  %s995_s16 = smov [#allocation8]   ;;  %s214_s15 = int_to_ptr.vmem [resolvable:$true] %s213_s15 }
  0x12   : > { %p743_p10 = pneg %p1088_p8  ;;  %s996_s17 = smov [#allocation7]  }
  0x13   : > { %s997_s18 = smov [#allocation10]   ;;  %s45_s19 = sadd.s32 1, %s981_s22 }
  0x14   : > { %p744_p11 = pnand %p743_p10, %p1065_p1  ;;  %s36_s4 = sadd.s32 1, %s989_s24 }
  0x15   : > { %p52_p12 = scmp.ne.s32.totalorder %s981_s22, %s977_s21  ;;  %p38_p13 = scmp.ge.s32.totalorder %s36_s4, 2 }
  0x16   : > { %749 = dma.vmem_to_smem (!%p744_p11), %s204_s8, 16, %s995_s16, [#allocation9]  }
  0x17   : > { %746 = dma.vmem_to_smem (!%p744_p11), %s194_s12, 32, %s996_s17, [#allocation6]  }
  0x18   : > { %752 = dma.vmem_to_smem (!%p744_p11), %s214_s15, 16, %s997_s18, [#allocation9]  }
  0x19   : > { %p53_p0 = scmp.eq.s32.totalorder %s993_s25, 0  ;;  %p1110_p3 = por %p1069_p2, %p52_p12 }
  0x1a   : > { %p764_p5 = scmp.lt.s32.totalorder %s993_s25, 2  ;;  %s1295_s4 = smov (%p38_p13, %s36_s4), 0 }
  0x1b   : > { %p1117_p7 = por %p53_p0, %p52_p12  ;;  %s227_s7 = sand.u32 1, %s981_s22  }
  0x1c   : > { %s40_s8 = ssub.s32 %s989_s24, %s1295_s4  ;;  %s692_s10 = sshll.u32 %s227_s7, 4 }
  0x1d   : > { %p43_p10 = scmp.eq.s32.totalorder %s40_s8, 0  ;;  %s725_s11 = sshll.u32 %s989_s24, 4 }
  0x1e   : > { %s238_s14 = scalar_lea.hbm %s1276_s0, %s725_s11  ;;  %s231_s15 = scalar_lea.vmem [#allocation3], %s692_s10 }
  0x1f   : > { %s1126_s28 = scalar_select %p43_p10, %s981_s22, %s45_s19  }
  0x20   : > { %s242_s16 = sshll.u32 %s231_s15, 4  ;;  %s240_s17 = sshll.u32 %s238_s14, 4  ;;  %s243_s16 = int_to_ptr.vmem [resolvable:$true] %s242_s16  ;;  %s241_s17 = int_to_ptr.hbm [resolvable:$true] %s240_s17 }
  0x21   : > { %p754_p2 = pnand %p764_p5, %p1117_p7  ;;  %s228_s18 = scalar_lea.sflag [#allocation4], %s227_s7 }
  0x22   : > { %251 = sbr.rel (%p1088_p8) target bundleno = 128 (0x80), region = 40  ;;  %s1138_s19 = sand.u32 (!%p1088_p8), 1, %s977_s21  }
  0x23   : > { %756 = dma.hbm_to_vmem [thread:$0]  (!%p754_p2), %s241_s17, 256, %s243_s16, %s228_s18  }
  0x24   : > { %s696_s8 = sshll.u32 (!%p1088_p8), %s1138_s19, 4  ;;  %s254_s10 = scalar_lea.sflag (!%p1088_p8), [#allocation4], %s1138_s19 }
  0x25   : > { %s257_s11 = scalar_lea.vmem (!%p1088_p8), [#allocation3], %s696_s8 }
  0x27   : > { %956 = dma.done.wait (%p1075_p4), %s254_s10, 256  }
  0x28   : > { %958 = vsyncadd (%p1075_p4), %s254_s10, 4294967040 }
  0x29   : > { %960 = dma.done.wait (%p1065_p1), [#allocation6], 32  }
  0x2a   : > { %962 = vsyncadd (%p1065_p1), [#allocation6], 4294967264 }
  0x2b   : > { %964 = dma.done.wait (%p1065_p1), [#allocation9], 32  }
  0x2c   : > { %966 = vsyncadd (%p1065_p1), [#allocation9], 4294967264 }
  0x2d   : > { %278 = sfence }
  0x2e   : > { %s307_s9 = sld [smem:[#allocation8]]  ;;  %v1156_v0 = vld [vmem:[%s257_s11] sm:$0xff]  ;;  %v1158_v1 = vld [vmem:[%s257_s11 + $0x8] sm:$0xff] }
  0x2f   : > { %s309_s6 = sld [smem:[#allocation7]] }
  0x30   : > { %s701_s7 = sld [smem:[#allocation7 + $0x1]] }
  0x31   : > { %s702_s12 = sld [smem:[#allocation7 + $0x2]] }
  0x32   : > { %s703_s13 = sld [smem:[#allocation7 + $0x3]] }
  0x33   : > { %s704_s29 = sld [smem:[#allocation7 + $0x4]] }
  0x34   : > { %s1160_s14 = sld [smem:[#allocation7 + $0x5]]  ;;  %v308_v2 = vstv %s307_s9 }
  0x35   : > { %v310_v3 = vstv %s309_s6  ;;  %s1162_s15 = sld [smem:[#allocation7 + $0x6]] }
  0x36   : > { %v311_v4 = vmul.f32 %v310_v3, %v1156_v0  ;;  %v312_v5 = vmul.f32 %v310_v3, %v1158_v1  ;;  %v316_v6 = vstv %s701_s7  ;;  %s1168_s27 = sld [smem:[#allocation7 + $0x7]] }
  0x37   : > { %v317_v7 = vmul.f32 %v316_v6, %v1156_v0  ;;  %v318_v8 = vmul.f32 %v316_v6, %v1158_v1  ;;  %v328_v9 = vstv %s702_s12  ;;  %s1172_s16 = sld [smem:[#allocation8 + $0x1]] }
  0x38   : > { %v313_v10 = vadd.f32 %v311_v4, %v308_v2  ;;  %v314_v11 = vadd.f32 %v312_v5, %v308_v2  ;;  %v329_v12 = vmul.f32 %v328_v9, %v1156_v0  ;;  %v330_v13 = vmul.f32 %v328_v9, %v1158_v1  ;;  %s1174_s17 = sld [smem:[#allocation7 + $0x80]] }
  0x39   : > { %v321_v14 = vrot.slane %v317_v7, 1  ;;  %v322_v15 = vrot.slane %v318_v8, 1  ;;  %v340_v16 = vstv %s703_s13  ;;  %v352_v17 = vstv %s704_s29  ;;  %s1178_s18 = sld [smem:[#allocation7 + $0x81]] }
  0x3a   : > { %v333_v18 = vrot.slane %v329_v12, 2  ;;  %v334_v19 = vrot.slane %v330_v13, 2  ;;  %v341_v20 = vmul.f32 %v340_v16, %v1156_v0  ;;  %v342_v21 = vmul.f32 %v340_v16, %v1158_v1  ;;  %s1182_s10 = sld [smem:[#allocation7 + $0x82]] }
  0x3b   : > { %v325_v22 = vadd.f32 %v321_v14, %v313_v10  ;;  %v326_v23 = vadd.f32 %v322_v15, %v314_v11  ;;  %v353_v24 = vmul.f32 %v352_v17, %v1156_v0  ;;  %v354_v25 = vmul.f32 %v352_v17, %v1158_v1  ;;  %s1191_s11 = sld [smem:[#allocation7 + $0x83]] }
  0x3c   : > { %v345_v26 = vrot.slane %v341_v20, 3  ;;  %v346_v27 = vrot.slane %v342_v21, 3  ;;  %v364_v28 = vstv %s1160_s14  ;;  %v376_v29 = vstv %s1162_s15  ;;  %s1193_s9 = sld [smem:[#allocation7 + $0x84]]  ;;  %s726_s15 = sshll.u32 %s985_s23, 4 }
  0x3d   : > { %v337_v30 = vadd.f32 %v333_v18, %v325_v22  ;;  %v338_v31 = vadd.f32 %v334_v19, %v326_v23  ;;  %v357_v32 = vrot.slane %v353_v24, 4  ;;  %v358_v33 = vrot.slane %v354_v25, 4  ;;  %s1201_s6 = sld [smem:[#allocation7 + $0x85]]  ;;  %s300_s23 = scalar_lea.vmem [#allocation11], %s696_s8 }
  0x3e   : > { %v365_v34 = vmul.f32 %v364_v28, %v1156_v0  ;;  %v366_v35 = vmul.f32 %v364_v28, %v1158_v1  ;;  %v377_v36 = vmul.f32 %v376_v29, %v1156_v0  ;;  %v378_v37 = vmul.f32 %v376_v29, %v1158_v1  ;;  %s1207_s7 = sld [smem:[#allocation7 + $0x86]] }
  0x3f   : > { %v349_v38 = vadd.f32 %v345_v26, %v337_v30  ;;  %v350_v39 = vadd.f32 %v346_v27, %v338_v31  ;;  %v388_v40 = vstv %s1168_s27  ;;  %v410_v48 = vstv %s1174_s17  ;;  %s1211_s12 = sld [smem:[#allocation7 + $0x87]]  ;;  %s565_s17 = scalar_lea.hbm %s1281_s5, %s726_s15 }
  0x40   : > { %v369_v41 = vrot.slane %v365_v34, 5  ;;  %v370_v42 = vrot.slane %v366_v35, 5  ;;  %v381_v45 = vrot.slane %v377_v36, 6  ;;  %v389_v46 = vmul.f32 %v388_v40, %v1156_v0  ;;  %s1215_s13 = sld [smem:[#allocation10]] }
  0x41   : > { %v361_v43 = vadd.f32 %v357_v32, %v349_v38  ;;  %v362_v44 = vadd.f32 %v358_v33, %v350_v39  ;;  %v382_v47 = vrot.slane %v378_v37, 6  ;;  %v416_v49 = vstv %s1178_s18  ;;  %s1223_s29 = sld [smem:[#allocation2]]  ;;  %s567_s18 = sshll.u32 %s300_s23, 4  ;;  %s568_s18 = int_to_ptr.vmem [resolvable:$true] %s567_s18 }
  0x42   : > { %v428_v50 = vstv %s1182_s10  ;;  %v390_v53 = vmul.f32 %v388_v40, %v1158_v1  ;;  %v408_v54 = vstv %s1172_s16  ;;  %v411_v55 = vmul.f32 %v410_v48, %v1156_v0  ;;  %s717_s14 = sld [smem:[#allocation10 + $0x1]]  ;;  %s569_s10 = sshll.u32 %s565_s17, 4  ;;  %s570_s10 = int_to_ptr.hbm [resolvable:$true] %s569_s10 }
  0x43   : > { %v373_v51 = vadd.f32 %v369_v41, %v361_v43  ;;  %v374_v52 = vadd.f32 %v370_v42, %v362_v44  ;;  %v412_v56 = vmul.f32 %v410_v48, %v1158_v1  ;;  %v417_v57 = vmul.f32 %v416_v49, %v1156_v0 }
  0x44   : > { %v418_v58 = vmul.f32 %v416_v49, %v1158_v1  ;;  %v393_v60 = vrot.slane %v389_v46, 7  ;;  %v429_v61 = vmul.f32 %v428_v50, %v1156_v0  ;;  %v430_v62 = vmul.f32 %v428_v50, %v1158_v1 }
  0x45   : > { %v385_v59 = vadd.f32 %v381_v45, %v373_v51  ;;  %v413_v63 = vadd.f32 %v411_v55, %v408_v54  ;;  %v414_v2 = vadd.f32 %v412_v56, %v408_v54  ;;  %v421_v3 = vrot.slane %v417_v57, 1 }
  0x46   : > { %v422_v4 = vrot.slane %v418_v58, 1  ;;  %v386_v5 = vadd.f32 %v382_v47, %v374_v52  ;;  %v394_v6 = vrot.slane %v390_v53, 7  ;;  %v433_v7 = vrot.slane %v429_v61, 2 }
  0x47   : > { %v434_v8 = vrot.slane %v430_v62, 2  ;;  %v425_v9 = vadd.f32 %v421_v3, %v413_v63  ;;  %v440_v11 = vstv %s1191_s11  ;;  %v452_v12 = vstv %s1193_s9  ;;  %s552_s11 = scalar_lea.sflag [#allocation5], %s1138_s19  ;;  %s917_s9 = sshra.s32 %s570_s10, 4  ;;  %s918_s9 = int_to_ptr.hbm [resolvable:$true] %s917_s9 }
  0x48   : > { %v426_v10 = vadd.f32 %v422_v4, %v414_v2  ;;  %v397_v13 = vadd.f32 %v393_v60, %v385_v59  ;;  %v441_v14 = vmul.f32 %v440_v11, %v1156_v0  ;;  %v442_v15 = vmul.f32 %v440_v11, %v1158_v1  ;;  %p924_p11 = scmp.lt.s32.totalorder %s918_s9, %s1281_s5 }
  0x49   : > { %v437_v16 = vadd.f32 %v433_v7, %v425_v9  ;;  %v453_v18 = vmul.f32 %v452_v12, %v1156_v0  ;;  %v454_v19 = vmul.f32 %v452_v12, %v1158_v1  ;;  %v398_v20 = vadd.f32 %v394_v6, %v386_v5 }
  0x4a   : > { %v438_v17 = vadd.f32 %v434_v8, %v426_v10  ;;  %v445_v21 = vrot.slane %v441_v14, 3  ;;  %v446_v22 = vrot.slane %v442_v15, 3  ;;  %v464_v25 = vstv %s1201_s6  ;;  %s919_s6 = scalar_lea.hbm %s918_s9, 16 }
  0x4b   : > { %v457_v23 = vrot.slane %v453_v18, 4  ;;  %v458_v24 = vrot.slane %v454_v19, 4  ;;  %v476_v26 = vstv %s1207_s7  ;;  %v400_v27 = vmax.f32 %v397_v13, 0.0  ;;  %p920_p1 = scmp.ne.s32.totalorder %s918_s9, %s919_s6 }
  0x4c   : > { %v449_v28 = vadd.f32 %v445_v21, %v437_v16  ;;  %v450_v29 = vadd.f32 %v446_v22, %v438_v17  ;;  %v465_v30 = vmul.f32 %v464_v25, %v1156_v0  ;;  %v466_v31 = vmul.f32 %v464_v25, %v1158_v1 }
  0x4d   : > { %v477_v32 = vmul.f32 %v476_v26, %v1156_v0  ;;  %v478_v33 = vmul.f32 %v476_v26, %v1158_v1  ;;  %v401_v34 = vmax.f32 %v398_v20, 0.0  ;;  %v488_v37 = vstv %s1211_s12  ;;  %p921_p4 = pnand %p920_p1, %p1110_p3  ;;  %s923_s12 = scalar_lea.hbm %s1281_s5, 32 }
  0x4e   : > { %v461_v35 = vadd.f32 %v457_v23, %v449_v28  ;;  %v462_v36 = vadd.f32 %v458_v24, %v450_v29  ;;  %v469_v38 = vrot.slane %v465_v30, 5  ;;  %v470_v39 = vrot.slane %v466_v31, 5  ;;  %p925_p12 = scmp.lt.s32.totalorder %s923_s12, %s919_s6 }
  0x4f   : > { %v481_v40 = vrot.slane %v477_v32, 6  ;;  %v482_v41 = vrot.slane %v478_v33, 6  ;;  %v402_v42 = vstv %s1215_s13  ;;  %v489_v43 = vmul.f32 %v488_v37, %v1156_v0  ;;  %p922_p8 = pneg %p921_p4 }
  0x50   : > { %v490_v44 = vmul.f32 %v488_v37, %v1158_v1  ;;  %v473_v45 = vadd.f32 %v469_v38, %v461_v35  ;;  %v474_v46 = vadd.f32 %v470_v39, %v462_v36  ;;  %v403_v49 = vmul.f32 %v402_v42, %v400_v27  ;;  %p926_p13 = por %p925_p12, %p924_p11 }
  0x51   : > { %v493_v47 = vrot.slane %v489_v43, 7  ;;  %v404_v50 = vmul.f32 %v402_v42, %v401_v34  ;;  %v306_v53 = vstv %s1223_s29  ;;  %v502_v56 = vstv %s717_s14 }
  0x52   : > { %v494_v48 = vrot.slane %v490_v44, 7  ;;  %v485_v51 = vadd.f32 %v481_v40, %v473_v45  ;;  %v486_v52 = vadd.f32 %v482_v41, %v474_v46  ;;  %v405_v57 = vadd.f32 %v403_v49, %v306_v53  ;;  %p927_p0 = pnand %p926_p13, %p922_p8 }
  0x53   : > { %v406_v58 = vadd.f32 %v404_v50, %v306_v53 }
  0x54   : > { %v497_v54 = vadd.f32 %v493_v47, %v485_v51  ;;  %v498_v55 = vadd.f32 %v494_v48, %v486_v52 }
  0x56   : > { %v500_v59 = vmax.f32 %v497_v54, 0.0  ;;  %v501_v60 = vmax.f32 %v498_v55, 0.0 }
  0x58   : > { %v503_v61 = vmul.f32 %v502_v56, %v500_v59  ;;  %v504_v62 = vmul.f32 %v502_v56, %v501_v60 }
  0x5a   : > { %v505_v63 = vadd.f32 %v503_v61, %v405_v57  ;;  %v506_v2 = vadd.f32 %v504_v62, %v406_v58 }
  0x5c   : > { %v718_v3 = vmul.f32 -1.442695, %v505_v63  ;;  %v719_v4 = vmul.f32 -1.442695, %v506_v2 }
  0x5e   : > { %820 = vpow2.f32 %v718_v3 }
  0x5f   : > { %822 = vpow2.f32 %v719_v4 }
  0x64   : > { %v821_v5 = vpop.eup %820 }
  0x65   : > { %v823_v6 = vpop.eup %822  ;;  %v513_v7 = vadd.f32 1.0, %v821_v5 }
  0x66   : > { %v514_v8 = vadd.f32 1.0, %v823_v6 }
  0x67   : > { %824 = vrcp.f32 %v513_v7  ;;  %vm520_vm0 = vweird.f32 %v513_v7  ;;  %v526_v12 = vand.u32 2147483648, %v513_v7  ;;  %v524_v15 = vand.u32 2147483647, %v513_v7 }
  0x68   : > { %826 = vrcp.f32 %v514_v8  ;;  %v541_v16 = vand.u32 2147483648, %v514_v8  ;;  %vm535_vm2 = vweird.f32 %v514_v8  ;;  %v539_v18 = vand.u32 2147483647, %v514_v8 }
  0x69   : > { %v527_v20 = vor.u32 1.1754944e-38, %v526_v12  ;;  %vm525_vm5 = vcmp.eq.f32.partialorder %v524_v15, 8.507059e+37 }
  0x6a   : > { %v542_v23 = vor.u32 1.1754944e-38, %v541_v16  ;;  %vm540_vm7 = vcmp.eq.f32.partialorder %v539_v18, 8.507059e+37 }
  0x6d   : > { %v825_v9 = vpop.eup %824 }
  0x6e   : > { %v827_v10 = vpop.eup %826  ;;  %v516_v11 = vmul.f32 %v825_v9, %v513_v7  ;;  %vm521_vm1 = vweird.f32 %v825_v9 }
  0x6f   : > { %v531_v13 = vmul.f32 %v827_v10, %v514_v8  ;;  %vm536_vm3 = vweird.f32 %v827_v10  ;;  %vm522_vm4 = vmor %vm520_vm0, %vm521_vm1 }
  0x70   : > { %v517_v14 = vsub.f32 1.0, %v516_v11  ;;  %vm537_vm6 = vmor %vm535_vm2, %vm536_vm3 }
  0x71   : > { %v532_v17 = vsub.f32 1.0, %v531_v13 }
  0x72   : > { %v518_v19 = vmul.f32 %v825_v9, %v517_v14 }
  0x73   : > { %v533_v21 = vmul.f32 %v827_v10, %v532_v17 }
  0x74   : > { %v519_v22 = vadd.f32 %v825_v9, %v518_v19 }
  0x75   : > { %v534_v24 = vadd.f32 %v827_v10, %v533_v21 }
  0x76   : > { %v523_v25 = vsel %vm522_vm4, %v825_v9, %v519_v22 }
  0x77   : > { %v528_v26 = vsel %vm525_vm5, %v527_v20, %v523_v25  ;;  %v538_v27 = vsel %vm537_vm6, %v827_v10, %v534_v24 }
  0x78   : > { %v543_v28 = vsel %vm540_vm7, %v542_v23, %v538_v27  ;;  %v545_v29 = vperm.slane %v528_v26, 0 }
  0x79   : > { %v546_v30 = vperm.slane %v543_v28, 0 }
  0x7a   : > { %v547_v31 = vmul.f32 %v545_v29, %v1156_v0 }
  0x7b   : > { %v548_v32 = vmul.f32 %v546_v30, %v1158_v1 }
  0x7c   : > { %549 = vst [vmem:[%s300_s23] sm:$0xff] %v547_v31 }
  0x7d   : > { %550 = vst [vmem:[%s300_s23 + $0x8] sm:$0xff] %v548_v32 }
  0x7e   : > { %930 = shalt.err (!%p927_p0)
}
  0x7f   : > { %741 = dma.vmem_to_hbm [thread:$0]  (%p1110_p3), %s568_s18, 256, %s570_s10, %s552_s11  }
  0x80 PF: > { %s581_s19 = sand.u32 1, %s973_s20   ;;  %p758_p5 = pnand %p691_p9, %p1080_p6 }
  0x81   : > { %s582_s14 = scalar_lea.sflag [#allocation5], %s581_s19 }
  0x82   : > { %p759_p7 = pneg %p758_p5 }
  0x84   : > { %968 = dma.done.wait (%p759_p7), %s582_s14, 256  }
  0x85   : > { %970 = vsyncadd (%p759_p7), %s582_s14, 4294967040  ;;  %s24_s25 = sadd.s32 1, %s993_s25   ;;  %s1289_s20 = smov %s977_s21 }
  0x86   : > { %p21_p10 = scmp.ge.s32.totalorder %s24_s25, 4   ;;  %s1290_s21 = smov %s981_s22 }
  0x87   : > { %s1291_s22 = smov %s1126_s28  ;;  %s1292_s23 = smov %s989_s24 }
  0x88   : > { %s1293_s24 = smov %s1295_s4  ;;  %23 = sbr.rel (!%p21_p10) target bundleno = 10 (0xa), region = 98 }
  0x8d   :  { %588 = vsyncpa [#allocation4], 1 }
  0x8e   :  { %590 = vsyncpa [#allocation4 + $0x1], 1 }
  0x8f   :  { %591 = vsyncpa [#allocation5], 1 }
  0x90   :  { %593 = vsyncpa [#allocation5 + $0x1], 1 }
  0x91   :  { %594 = vsyncpa [#allocation6], 1 }
  0x92   :  { %596 = vsyncpa [#allocation6 + $0x1], 1 }
  0x93   :  { %597 = vsyncpa [#allocation9], 1 }

</bundles_post_ra>
